<compile_context>
chip_gen: v7x
topology: tpu7x:2x2x1
jax: 0.10.0
libtpu: 0.0.40
codegen_flags: <defaults>
</compile_context>

<pallas_src>
import jax
import jax.numpy as jnp
from jax.experimental import pallas as pl
from jax.experimental.pallas import tpu as pltpu

H1, H2 = 400, 300
H1_PAD, H2_PAD = 512, 384      # next multiples of 128 (lane width)
OUT_LANES = 128                # lane-dense output block width (col 0 = Q)
MEGACORE_MIN_SPLIT = 256       # split batches >= this into >=2 tiles (v7x megacore)


def _round_up(n, m):
    return ((n + m - 1) // m) * m


def _critic_kernel(xu_ref, w1_ref, b1_ref, w2_ref, b2_ref, w3_ref, b3_ref, out_ref):
    # xu: (tb, K_PAD) bf16         w1: (K_PAD, H1_PAD) bf16   b1: (1, H1_PAD) f32
    # w2: (H1_PAD, H2_PAD) bf16    b2: (1, H2_PAD) f32
    # w3: (H2_PAD, OUT_LANES) f32 (col 0 real, rest zero)     b3: (1,1) f32 in SMEM
    cdt = w2_ref.dtype

    # Layer 1 (concat already fused into xu / w1): f32 MXU accumulation.
    h1 = jnp.dot(xu_ref[...], w1_ref[...], preferred_element_type=jnp.float32)
    h1 = jnp.maximum(h1 + b1_ref[...], 0.0)

    # Layer 2.
    h2 = jnp.dot(h1.astype(cdt), w2_ref[...], preferred_element_type=jnp.float32)
    h2 = jnp.maximum(h2 + b2_ref[...], 0.0)

    # Layer 3: lane-dense MXU matmul against zero-padded w3 -> unmasked (tb,128) store.
    q = jnp.dot(h2, w3_ref[...], preferred_element_type=jnp.float32)
    out_ref[...] = (q + b3_ref[0, 0]).astype(out_ref.dtype)


def init_critic_params(key, state_dim, action_dim):
    """f32 params, PyTorch nn.Linear default init, stored as (in, out) / (1, out)."""
    dims = [(state_dim + action_dim, H1), (H1, H2), (H2, 1)]
    params = []
    for fan_in, fan_out in dims:
        key, kw, kb = jax.random.split(key, 3)
        bound = 1.0 / jnp.sqrt(float(fan_in))
        w = jax.random.uniform(kw, (fan_in, fan_out), jnp.float32, -bound, bound)
        b = jax.random.uniform(kb, (1, fan_out), jnp.float32, -bound, bound)
        params.extend([w, b])
    return tuple(params)


def prepare_params(params, state_dim, action_dim, compute_dtype=jnp.bfloat16):
    """Zero-pad in/hidden dims to lane/sublane multiples and cast. Padding is exact."""
    w1, b1, w2, b2, w3, b3 = params
    k = state_dim + action_dim
    k_pad = _round_up(k, 16)  # bf16 sublane pack on the weight side

    def pad2(a, rows, cols):
        return jnp.pad(a, ((0, rows - a.shape[0]), (0, cols - a.shape[1])))

    w1p = pad2(w1, k_pad, H1_PAD).astype(compute_dtype)
    b1p = pad2(b1, 1, H1_PAD).astype(jnp.float32)
    w2p = pad2(w2, H1_PAD, H2_PAD).astype(compute_dtype)
    b2p = pad2(b2, 1, H2_PAD).astype(jnp.float32)
    w3p = pad2(w3, H2_PAD, OUT_LANES).astype(jnp.float32)  # col 0 real, rest zero
    b3p = b3.astype(jnp.float32)                            # (1,1) scalar -> SMEM
    return (w1p, b1p, w2p, b2p, w3p, b3p)


def critic_forward(x, u, prepared_params, *, block_b=1024, compute_dtype=jnp.bfloat16):
    """x: (B, state_dim), u: (B, action_dim) -> (B, 1) float32 Q-values."""
    w1, b1, w2, b2, w3, b3 = prepared_params
    B, S = x.shape
    A = u.shape[1]
    K = S + A
    K_PAD = w1.shape[0]

    # --- Batch tile selection (multiple of 16 for bf16 sublane packing) ---
    blk = max(_round_up(block_b, 16), 16)
    B16 = _round_up(B, 16)
    if B16 <= blk:
        if B16 >= MEGACORE_MIN_SPLIT:
            # Split a moderate batch into 2 tiles so the "parallel" batch axis can
            # shard across the two TensorCores on v7x (no-op on v5e/v6e).
            tb = _round_up((B16 + 1) // 2, 16)
        else:
            tb = B16
    else:
        tb = blk
    b_pad = _round_up(B, tb)

    # --- Fuse the concat in the wrapper; pad batch + feature dims (zeros are exact) ---
    xu = jnp.concatenate([x, u], axis=1)
    if b_pad != B or K_PAD != K:
        xu = jnp.pad(xu, ((0, b_pad - B), (0, K_PAD - K)))
    xu = xu.astype(compute_dtype)

    grid = (b_pad // tb,)
    batch_map = lambda i: (i, 0)
    const_map = lambda i: (0, 0)

    # --- VMEM budget: double-buffered streams + double-buffered weights + live acts ---
    stream_bytes_per_row = K_PAD * 2 + OUT_LANES * 4
    act_bytes_per_row = H1_PAD * 4 + H1_PAD * 2 + H2_PAD * 4 + H2_PAD * 2
    weight_bytes = (K_PAD * H1_PAD * 2 + H1_PAD * 4
                    + H1_PAD * H2_PAD * 2 + H2_PAD * 4
                    + H2_PAD * OUT_LANES * 4)
    vmem_est = 2 * tb * stream_bytes_per_row + tb * act_bytes_per_row + 2 * weight_bytes
    vmem_limit = int(min(max(vmem_est * 3 // 2 + (4 << 20), 16 << 20), 64 << 20))

    flops = 2 * b_pad * (K_PAD * H1_PAD + H1_PAD * H2_PAD + H2_PAD * OUT_LANES)
    bytes_accessed = (b_pad * K_PAD * 2            # xu read
                      + b_pad * OUT_LANES * 4      # out write
                      + weight_bytes + 4)          # weights read once

    out = pl.pallas_call(
        _critic_kernel,
        out_shape=jax.ShapeDtypeStruct((b_pad, OUT_LANES), jnp.float32),
        grid=grid,
        in_specs=[
            pl.BlockSpec((tb, K_PAD), batch_map),            # xu streamed per tile
            pl.BlockSpec(w1.shape, const_map),               # weights: VMEM-resident,
            pl.BlockSpec(b1.shape, const_map),               # DMA'd once
            pl.BlockSpec(w2.shape, const_map),
            pl.BlockSpec(b2.shape, const_map),
            pl.BlockSpec(w3.shape, const_map),
            pl.BlockSpec(memory_space=pltpu.MemorySpace.SMEM),   # b3 scalar
        ],
        out_specs=pl.BlockSpec((tb, OUT_LANES), batch_map),
        compiler_params=pltpu.CompilerParams(
            dimension_semantics=("parallel",),               # megacore-shard batch
            vmem_limit_bytes=vmem_limit,
        ),
        cost_estimate=pl.CostEstimate(
            flops=flops, transcendentals=0, bytes_accessed=bytes_accessed),
    )(xu, w1, b1, w2, b2, w3, b3)

    return out[:B, :1]   # column 0 holds Q; padded rows/cols sliced away


def _reference(x, u, params):
    w1, b1, w2, b2, w3, b3 = params
    xu = jnp.concatenate([x, u], axis=1)
    h = jnp.maximum(xu @ w1 + b1, 0.0)
    h = jnp.maximum(h @ w2 + b2, 0.0)
    return h @ w3 + b3


if __name__ == "__main__":
    state_dim, action_dim, batch = 16, 4, 8

    key = jax.random.PRNGKey(0)
    kx, ku, kp = jax.random.split(key, 3)
    x = jax.random.normal(kx, (batch, state_dim), jnp.float32)
    u = jax.random.normal(ku, (batch, action_dim), jnp.float32)

    raw_params = init_critic_params(kp, state_dim, action_dim)
    params = prepare_params(raw_params, state_dim, action_dim)

    # Single-tile run (grid = 1).
    q = critic_forward(x, u, params)
    jax.block_until_ready(q)
    ref = _reference(x, u, raw_params)
    assert q.shape == (batch, 1)
    assert bool(jnp.allclose(q, ref, atol=3e-2, rtol=3e-2)), "mismatch (grid=1)"

    # Multi-tile run exercising batch tiling + padding (grid = 2).
    batch2 = 24
    kx2, ku2 = jax.random.split(jax.random.PRNGKey(1))
    x2 = jax.random.normal(kx2, (batch2, state_dim), jnp.float32)
    u2 = jax.random.normal(ku2, (batch2, action_dim), jnp.float32)
    q2 = critic_forward(x2, u2, params, block_b=16)
    jax.block_until_ready(q2)
    ref2 = _reference(x2, u2, raw_params)
    assert q2.shape == (batch2, 1)
    assert bool(jnp.allclose(q2, ref2, atol=3e-2, rtol=3e-2)), "mismatch (grid=2)"

    print("KERNEL_OK")
</pallas_src>

<mosaic_0001>
module attributes {stable_mosaic.version = 11 : i64} {
  func.func @_critic_kernel(%arg0: i32, %arg1: memref<16x32xbf16, #tpu.memory_space<vmem>>, %arg2: memref<32x512xbf16, #tpu.memory_space<vmem>>, %arg3: memref<1x512xf32, #tpu.memory_space<vmem>>, %arg4: memref<512x384xbf16, #tpu.memory_space<vmem>>, %arg5: memref<1x384xf32, #tpu.memory_space<vmem>>, %arg6: memref<384x128xf32, #tpu.memory_space<vmem>>, %arg7: memref<1x1xf32, #tpu.memory_space<smem>>, %arg8: memref<16x128xf32, #tpu.memory_space<vmem>>) attributes {dimension_semantics = [#tpu.dimension_semantics<parallel>], iteration_bounds = array<i64: 1>, scalar_prefetch = 0 : i64, scratch_operands = 0 : i64, tpu.core_type = #tpu.core_type<tc>, window_params = [{transform_indices = @transform_0, window_bounds = array<i64: 16, 32>}, {pipeline_mode = #tpu.pipeline_mode<synchronous>, transform_indices = @transform_1, window_bounds = array<i64: 32, 512>}, {pipeline_mode = #tpu.pipeline_mode<synchronous>, transform_indices = @transform_2, window_bounds = array<i64: 1, 512>}, {pipeline_mode = #tpu.pipeline_mode<synchronous>, transform_indices = @transform_3, window_bounds = array<i64: 512, 384>}, {pipeline_mode = #tpu.pipeline_mode<synchronous>, transform_indices = @transform_4, window_bounds = array<i64: 1, 384>}, {pipeline_mode = #tpu.pipeline_mode<synchronous>, transform_indices = @transform_5, window_bounds = array<i64: 384, 128>}, {transform_indices = @transform_6, window_bounds = array<i64: 1, 1>}, {transform_indices = @transform_7, window_bounds = array<i64: 16, 128>}]} {
    %c0 = arith.constant 0 : index
    %c0_0 = arith.constant 0 : index
    %0 = vector.load %arg1[%c0, %c0_0] : memref<16x32xbf16, #tpu.memory_space<vmem>>, vector<16x32xbf16>
    %c0_1 = arith.constant 0 : index
    %c0_2 = arith.constant 0 : index
    %1 = vector.load %arg2[%c0_1, %c0_2] : memref<32x512xbf16, #tpu.memory_space<vmem>>, vector<32x512xbf16>
    %cst = arith.constant dense<0.000000e+00> : vector<16x512xf32>
    %2 = tpu.matmul %0, %1, %cst {dimension_numbers = #tpu.dot_dimension_numbers<[1], [0], [0], [1], [0, 0, 1, 1], [], []>} : vector<16x32xbf16>, vector<32x512xbf16>, vector<16x512xf32> -> vector<16x512xf32>
    %c0_3 = arith.constant 0 : index
    %c0_4 = arith.constant 0 : index
    %3 = vector.load %arg3[%c0_3, %c0_4] : memref<1x512xf32, #tpu.memory_space<vmem>>, vector<1x512xf32>
    %4 = vector.broadcast %3 : vector<1x512xf32> to vector<16x512xf32>
    %5 = arith.addf %2, %4 : vector<16x512xf32>
    %cst_5 = arith.constant 0.000000e+00 : f32
    %6 = vector.broadcast %cst_5 : f32 to vector<16x512xf32>
    %7 = arith.maximumf %5, %6 : vector<16x512xf32>
    %8 = arith.truncf %7 : vector<16x512xf32> to vector<16x512xbf16>
    %c0_6 = arith.constant 0 : index
    %c0_7 = arith.constant 0 : index
    %9 = vector.load %arg4[%c0_6, %c0_7] : memref<512x384xbf16, #tpu.memory_space<vmem>>, vector<512x384xbf16>
    %cst_8 = arith.constant dense<0.000000e+00> : vector<16x384xf32>
    %10 = tpu.matmul %8, %9, %cst_8 {dimension_numbers = #tpu.dot_dimension_numbers<[1], [0], [0], [1], [0, 0, 1, 1], [], []>} : vector<16x512xbf16>, vector<512x384xbf16>, vector<16x384xf32> -> vector<16x384xf32>
    %c0_9 = arith.constant 0 : index
    %c0_10 = arith.constant 0 : index
    %11 = vector.load %arg5[%c0_9, %c0_10] : memref<1x384xf32, #tpu.memory_space<vmem>>, vector<1x384xf32>
    %12 = vector.broadcast %11 : vector<1x384xf32> to vector<16x384xf32>
    %13 = arith.addf %10, %12 : vector<16x384xf32>
    %cst_11 = arith.constant 0.000000e+00 : f32
    %14 = vector.broadcast %cst_11 : f32 to vector<16x384xf32>
    %15 = arith.maximumf %13, %14 : vector<16x384xf32>
    %c0_12 = arith.constant 0 : index
    %c0_13 = arith.constant 0 : index
    %16 = vector.load %arg6[%c0_12, %c0_13] : memref<384x128xf32, #tpu.memory_space<vmem>>, vector<384x128xf32>
    %cst_14 = arith.constant dense<0.000000e+00> : vector<16x128xf32>
    %17 = tpu.matmul %15, %16, %cst_14 {dimension_numbers = #tpu.dot_dimension_numbers<[1], [0], [0], [1], [0, 0, 1, 1], [], []>} : vector<16x384xf32>, vector<384x128xf32>, vector<16x128xf32> -> vector<16x128xf32>
    %c0_15 = arith.constant 0 : index
    %c0_16 = arith.constant 0 : index
    %18 = memref.load %arg7[%c0_15, %c0_16] : memref<1x1xf32, #tpu.memory_space<smem>>
    %19 = vector.broadcast %18 : f32 to vector<16x128xf32>
    %20 = arith.addf %17, %19 : vector<16x128xf32>
    %c0_17 = arith.constant 0 : index
    %c0_18 = arith.constant 0 : index
    %21 = vector.load %arg8[%c0_17, %c0_18] : memref<16x128xf32, #tpu.memory_space<vmem>>, vector<16x128xf32>
    tpu.vector_store %arg8[%c0_17, %c0_18], %20 {strides = array<i32>} : memref<16x128xf32, #tpu.memory_space<vmem>>, vector<16x128xf32>,
    return
  }
  func.func @transform_0(%arg0: i32) -> (i32, i32) {
    %c0_i32 = arith.constant 0 : i32
    %c0_i32_0 = arith.constant 0 : i32
    return %arg0, %c0_i32 : i32, i32
  }
  func.func @transform_1(%arg0: i32) -> (i32, i32) {
    %c0_i32 = arith.constant 0 : i32
    %c0_i32_0 = arith.constant 0 : i32
    %c0_i32_1 = arith.constant 0 : i32
    return %c0_i32, %c0_i32_0 : i32, i32
  }
  func.func @transform_2(%arg0: i32) -> (i32, i32) {
    %c0_i32 = arith.constant 0 : i32
    %c0_i32_0 = arith.constant 0 : i32
    %c0_i32_1 = arith.constant 0 : i32
    return %c0_i32, %c0_i32_0 : i32, i32
  }
  func.func @transform_3(%arg0: i32) -> (i32, i32) {
    %c0_i32 = arith.constant 0 : i32
    %c0_i32_0 = arith.constant 0 : i32
    %c0_i32_1 = arith.constant 0 : i32
    return %c0_i32, %c0_i32_0 : i32, i32
  }
  func.func @transform_4(%arg0: i32) -> (i32, i32) {
    %c0_i32 = arith.constant 0 : i32
    %c0_i32_0 = arith.constant 0 : i32
    %c0_i32_1 = arith.constant 0 : i32
    return %c0_i32, %c0_i32_0 : i32, i32
  }
  func.func @transform_5(%arg0: i32) -> (i32, i32) {
    %c0_i32 = arith.constant 0 : i32
    %c0_i32_0 = arith.constant 0 : i32
    %c0_i32_1 = arith.constant 0 : i32
    return %c0_i32, %c0_i32_0 : i32, i32
  }
  func.func @transform_6(%arg0: i32) -> (i32, i32) {
    %c0_i32 = arith.constant 0 : i32
    %c0_i32_0 = arith.constant 0 : i32
    %c0_i32_1 = arith.constant 0 : i32
    return %c0_i32, %c0_i32_0 : i32, i32
  }
  func.func @transform_7(%arg0: i32) -> (i32, i32) {
    %c0_i32 = arith.constant 0 : i32
    %c0_i32_0 = arith.constant 0 : i32
    return %arg0, %c0_i32 : i32, i32
  }
}

</mosaic_0001>

<bundles_post_ra>
// kernel: tpu_custom_call.1
= control target key start
LH: loop header
LB: loop body
LE: loop exit
PB: predicated region body
PF: predicated region fallthrough
CT: control target
= control target key end

     0   :  { %13 = vsyncpa [#allocation4], 0  ;;  %s2053_s0 = inlined_call_operand.hbm [shape: bf16[16,32], index: 0, kind: input, shape index: {}]   ;;  %s2054_s1 = inlined_call_operand.hbm [shape: bf16[32,512], index: 1, kind: input, shape index: {}]   ;;  %s2055_s2 = inlined_call_operand.vmem [shape: f32[1,512], index: 2, kind: input, shape index: {}]   ;;  %s2056_s3 = inlined_call_operand.hbm [shape: bf16[512,384], index: 3, kind: input, shape index: {}]   ;;  %s2057_s4 = inlined_call_operand.vmem [shape: f32[1,384], index: 4, kind: input, shape index: {}]   ;;  %s2058_s5 = inlined_call_operand.hbm [shape: f32[384,128], index: 5, kind: input, shape index: {}]   ;;  %s2059_s6 = inlined_call_operand.<no memory space> [shape: f32[1,1], index: 6, kind: input, shape index: {}]   ;;  %s2060_s7 = inlined_call_operand.hbm [shape: f32[16,128], index: 7, kind: output, shape index: {}]  }
   0x1   :  { %14 = vsyncpa [#allocation7], 0 }
   0x2   :  { %15 = vsyncpa [#allocation10], 0 }
   0x3   :  { %16 = vsyncpa [#allocation5], 0  ;;  %s1902_s24 = smov [#allocation6]   ;;  %s1784_s28 = scalar_lea.hbm %s2054_s1, 1024 }
   0x4   :  { %s34_s25 = sshll.u32 %s1902_s24, 4  ;;  %p1785_p0 = scmp.ne.s32.totalorder %s2054_s1, %s1784_s28  ;;  %s35_s25 = int_to_ptr.vmem [resolvable:$true] %s34_s25 }
   0x5   :  { %p1788_p1 = scmp.lt.u32.totalorder %s1784_s28, %s2054_s1 }
   0x7   :  { %p1790_p2 = pnand %p1788_p1, %p1785_p0 }
   0x9   :  { %1793 = shalt.err (!%p1790_p2)
}
   0xa   :  { %s1794_s10 = scalar_lea.vmem %s35_s25, 1024  ;;  %p1799_p4 = scmp.lt.s32.totalorder %s35_s25, %s35_s25 }
   0xb   :  { %p1795_p3 = scmp.ne.s32.totalorder %s35_s25, %s1794_s10  ;;  %p1800_p5 = scmp.lt.s32.totalorder %s1794_s10, %s1794_s10 }
   0xd   :  { %p1801_p6 = por %p1800_p5, %p1799_p4 }
   0xf   :  { %p1802_p7 = pnand %p1801_p6, %p1795_p3 }
  0x11   :  { %1805 = shalt.err (!%p1802_p7)
}
  0x12   :  { %s1903_s11 = smov 256   ;;  %s1904_s12 = smov 16  }
  0x13   :  { %40 = dma.hbm_to_vmem [thread:$0]  %s2054_s1, 1024, %s35_s25, [#allocation7], %s1903_s11, %s1903_s11, %s1904_s12  }
  0x14   :  { %s1905_s15 = smov [#allocation3]   ;;  %s1806_s19 = scalar_lea.hbm %s2053_s0, 128 }
  0x15   :  { %s22_s16 = sshll.u32 %s1905_s15, 4  ;;  %p1807_p8 = scmp.ne.s32.totalorder %s2053_s0, %s1806_s19  ;;  %s23_s16 = int_to_ptr.vmem [resolvable:$true] %s22_s16 }
  0x16   :  { %p1810_p9 = scmp.lt.u32.totalorder %s1806_s19, %s2053_s0 }
  0x18   :  { %p1812_p10 = pnand %p1810_p9, %p1807_p8 }
  0x1a   :  { %1815 = shalt.err (!%p1812_p10)
}
  0x1b   :  { %s1816_s24 = scalar_lea.vmem %s23_s16, 128  ;;  %p1821_p12 = scmp.lt.s32.totalorder %s23_s16, %s23_s16 }
  0x1c   :  { %p1817_p11 = scmp.ne.s32.totalorder %s23_s16, %s1816_s24  ;;  %p1822_p13 = scmp.lt.s32.totalorder %s1816_s24, %s1816_s24 }
  0x1e   :  { %p1823_p0 = por %p1822_p13, %p1821_p12 }
  0x20   :  { %p1824_p1 = pnand %p1823_p0, %p1817_p11 }
  0x22   :  { %1827 = shalt.err (!%p1824_p1)
}
  0x23   :  { %s1906_s1 = smov 64   ;;  %s1907_s25 = smov 4  }
  0x24   :  { %28 = dma.hbm_to_vmem [thread:$0]  %s2053_s0, 128, %s23_s16, [#allocation4], %s1906_s1, %s1906_s1, %s1907_s25  }
  0x25   :  { %s1908_s28 = smov [#allocation8]   ;;  %s1828_s9 = scalar_lea.hbm %s2056_s3, 12288 }
  0x26   :  { %s48_s29 = sshll.u32 %s1908_s28, 4  ;;  %p1829_p2 = scmp.ne.s32.totalorder %s2056_s3, %s1828_s9  ;;  %s49_s29 = int_to_ptr.vmem [resolvable:$true] %s48_s29 }
  0x27   :  { %p1832_p3 = scmp.lt.u32.totalorder %s1828_s9, %s2056_s3 }
  0x29   :  { %p1834_p4 = pnand %p1832_p3, %p1829_p2 }
  0x2b   :  { %1837 = shalt.err (!%p1834_p4)
}
  0x2c   :  { %s1838_s14 = scalar_lea.vmem %s49_s29, 12288  ;;  %p1843_p6 = scmp.lt.s32.totalorder %s49_s29, %s49_s29 }
  0x2d   :  { %p1839_p5 = scmp.ne.s32.totalorder %s49_s29, %s1838_s14  ;;  %p1844_p7 = scmp.lt.s32.totalorder %s1838_s14, %s1838_s14 }
  0x2f   :  { %p1845_p8 = por %p1844_p7, %p1843_p6 }
  0x31   :  { %p1846_p9 = pnand %p1845_p8, %p1839_p5 }
  0x33   :  { %1849 = shalt.err (!%p1846_p9)
}
  0x34   :  { %s1909_s0 = smov 192   ;;  %s1910_s15 = smov 12  }
  0x35   :  { %54 = dma.hbm_to_vmem [thread:$0]  %s2056_s3, 12288, %s49_s29, [#allocation7], %s1909_s0, %s1909_s0, %s1910_s15  }
  0x36   :  { %s1911_s18 = smov [#allocation9]   ;;  %s1850_s22 = scalar_lea.hbm %s2058_s5, 6144 }
  0x37   :  { %s62_s19 = sshll.u32 %s1911_s18, 4  ;;  %p1851_p10 = scmp.ne.s32.totalorder %s2058_s5, %s1850_s22  ;;  %s63_s19 = int_to_ptr.vmem [resolvable:$true] %s62_s19 }
  0x38   :  { %p1854_p11 = scmp.lt.u32.totalorder %s1850_s22, %s2058_s5 }
  0x3a   :  { %p1856_p12 = pnand %p1854_p11, %p1851_p10 }
  0x3c   :  { %1859 = shalt.err (!%p1856_p12)
}
  0x3d   :  { %s1860_s26 = scalar_lea.vmem %s63_s19, 6144  ;;  %p1865_p0 = scmp.lt.s32.totalorder %s63_s19, %s63_s19 }
  0x3e   :  { %p1861_p13 = scmp.ne.s32.totalorder %s63_s19, %s1860_s26  ;;  %p1866_p1 = scmp.lt.s32.totalorder %s1860_s26, %s1860_s26 }
  0x40   :  { %p1867_p2 = por %p1866_p1, %p1865_p0 }
  0x42   :  { %p1868_p3 = pnand %p1867_p2, %p1861_p13 }
  0x44   :  { %1871 = shalt.err (!%p1868_p3)
}
  0x45   :  { %s1912_s3 = smov 128   ;;  %s1913_s27 = smov 8  }
  0x46   :  { %68 = dma.hbm_to_vmem [thread:$0]  %s2058_s5, 6144, %s63_s19, [#allocation10], %s1912_s3, %s1912_s3, %s1913_s27  }
  0x47   :  { %1894 = dma.done.wait [#allocation4], 128  }
  0x48   :  { %1895 = vsyncadd [#allocation4], 4294967168 }
  0x49   :  { %1896 = dma.done.wait [#allocation7], 13312  }
  0x4a   :  { %1897 = vsyncadd [#allocation7], 4294953984 }
  0x4b   :  { %1898 = dma.done.wait [#allocation10], 6144  }
  0x4c   :  { %1899 = vsyncadd [#allocation10], 4294961152  ;;  %v1914_v0 = vmov 0   ;;  %v1643_v1 = vld [vmem:[#allocation6 + $0x4] ss:$16 sps:$4 sm:$0xff]   ;;  %v1649_v5 = vld [vmem:[#allocation3] sm:$0xff]   ;;  %v96_v60 = vlaneseq }
  0x4d   :  { %197 = vmatprep.mubr.bf16.mxu0 %v1914_v0  ;;  %240 = vmatprep.mubr.bf16.mxu1 %v1914_v0  ;;  %v1645_v2 = vld [vmem:[#allocation6] ss:$16 sps:$4 sm:$0xff]   ;;  %v1646_v3 = vld [vmem:[#allocation6 + $0x24] ss:$16 sps:$4 sm:$0xff]   ;;  %v1650_v6 = vld [vmem:[#allocation6 + $0xc] ss:$16 sps:$4 sm:$0xff]  }
  0x4e   :  { %165 = vmatprep.subr.bf16.mxu0 %v1643_v1  ;;  %v1648_v4 = vld [vmem:[#allocation6 + $0x20] ss:$16 sps:$4 sm:$0xff]   ;;  %v1652_v7 = vld [vmem:[#allocation6 + $0x8] ss:$16 sps:$4 sm:$0xff]   ;;  %v1653_v8 = vld [vmem:[#allocation6 + $0x2c] ss:$16 sps:$4 sm:$0xff]   ;;  %208 = vmatprep.subr.bf16.mxu1 %v1650_v6 }
  0x4f   :  { %166 = vmatpush1.bf16.msra.mxu0 %v1645_v2  ;;  %v1655_v9 = vld [vmem:[#allocation6 + $0x28] ss:$16 sps:$4 sm:$0xff]   ;;  %vm161_vm0 = vcmask 261120   ;;  %209 = vmatpush1.bf16.msra.mxu1 %v1652_v7  ;;  %v1656_v10 = vld [vmem:[#allocation8] ss:$12 sps:$4 sm:$0xff]   ;;  %v2007_v61 = vshrl.u32 %v96_v60, 7 }
  0x50   :  { %167 = vmatprep.subr.bf16.mxu0 %v1646_v3  ;;  %v1658_v11 = vld [vmem:[#allocation8 + $0x4] ss:$12 sps:$4 sm:$0xff]   ;;  %210 = vmatprep.subr.bf16.mxu1 %v1653_v8  ;;  %v1661_v12 = vld [vmem:[#allocation8 + $0x1c] ss:$12 sps:$4 sm:$0xff]   ;;  %v1664_v14 = vld [vmem:[#allocation8 + $0x34] ss:$12 sps:$4 sm:$0xff]  }
  0x51   :  { %v1659_v13 = vld [vmem:[#allocation8 + $0x18] ss:$12 sps:$4 sm:$0xff]   ;;  %v1662_v15 = vld [vmem:[#allocation8 + $0x30] ss:$12 sps:$4 sm:$0xff]   ;;  %v1665_v17 = vld [vmem:[#allocation8 + $0x48] ss:$12 sps:$4 sm:$0xff]  }
  0x52   :  { %v1667_v16 = vld [vmem:[#allocation8 + $0x4c] ss:$12 sps:$4 sm:$0xff]   ;;  %v1670_v18 = vld [vmem:[#allocation8 + $0x64] ss:$12 sps:$4 sm:$0xff]   ;;  %v1683_v19 = vld [vmem:[#allocation8 + $0xc8] ss:$12 sps:$4 sm:$0xff]  }
  0x53   :  { %168 = vmatpush1.bf16.msra.mxu0 %v1648_v4  ;;  %211 = vmatpush1.bf16.msra.mxu1 %v1655_v9  ;;  %v1684_v20 = vld [vmem:[#allocation8 + $0x8] ss:$12 sps:$4 sm:$0xff]   ;;  %v1668_v21 = vld [vmem:[#allocation8 + $0x60] ss:$12 sps:$4 sm:$0xff]   ;;  %v1693_v25 = vld [vmem:[#allocation8 + $0xf8] ss:$12 sps:$4 sm:$0xff]  }
  0x54   :  { %920 = vmatprep.subr.bf16.mxu0 %v1658_v11  ;;  %1422 = vmatprep.subr.bf16.mxu1 %v1683_v19  ;;  %v1688_v22 = vld [vmem:[#allocation8 + $0xe0] ss:$12 sps:$4 sm:$0xff]   ;;  %v1673_v24 = vld [vmem:[#allocation8 + $0x7c] ss:$12 sps:$4 sm:$0xff]   ;;  %v1694_v26 = vld [vmem:[#allocation8 + $0x38] ss:$12 sps:$4 sm:$0xff]  }
  0x55   :  { %v1689_v23 = vld [vmem:[#allocation8 + $0x20] ss:$12 sps:$4 sm:$0xff]   ;;  %v1671_v27 = vld [vmem:[#allocation8 + $0x78] ss:$12 sps:$4 sm:$0xff]   ;;  %v1698_v29 = vld [vmem:[#allocation8 + $0x110] ss:$12 sps:$4 sm:$0xff]  }
  0x56   :  { %1324 = vmatmul.mubr.msk.bf16.vlgmr.msra.gmra.mrb[0].mxu0 %vm161_vm0, %v1649_v5  ;;  %1325 = vmatmul.mubr.msk.bf16.vlgmr.msra.gmra.mrb[0].mxu1 %vm161_vm0, %v1649_v5  ;;  %v1676_v28 = vld [vmem:[#allocation8 + $0x94] ss:$12 sps:$4 sm:$0xff]   ;;  %v1699_v30 = vld [vmem:[#allocation8 + $0x50] ss:$12 sps:$4 sm:$0xff]   ;;  %v1679_v32 = vld [vmem:[#allocation8 + $0xac] ss:$12 sps:$4 sm:$0xff]  }
  0x57   :  { %921 = vmatpush1.bf16.msra.mxu0 %v1656_v10  ;;  %1423 = vmatpush3.bf16.msra.mxu1 %v1684_v20  ;;  %v1674_v31 = vld [vmem:[#allocation8 + $0x90] ss:$12 sps:$4 sm:$0xff]   ;;  %v1703_v33 = vld [vmem:[#allocation8 + $0x128] ss:$12 sps:$4 sm:$0xff]   ;;  %v1708_v36 = vld [vmem:[#allocation8 + $0x140] ss:$12 sps:$4 sm:$0xff]  }
  0x58   :  { %922 = vmatprep.subr.bf16.mxu0 %v1661_v12  ;;  %1424 = vmatprep.subr.bf16.mxu1 %v1688_v22  ;;  %v1677_v34 = vld [vmem:[#allocation8 + $0xa8] ss:$12 sps:$4 sm:$0xff]   ;;  %v1682_v37 = vld [vmem:[#allocation8 + $0xc4] ss:$12 sps:$4 sm:$0xff]   ;;  %v1680_v38 = vld [vmem:[#allocation8 + $0xc0] ss:$12 sps:$4 sm:$0xff]  }
  0x59   :  { %v1704_v35 = vld [vmem:[#allocation8 + $0x68] ss:$12 sps:$4 sm:$0xff]   ;;  %v1709_v39 = vld [vmem:[#allocation8 + $0x80] ss:$12 sps:$4 sm:$0xff]   ;;  %v1685_v41 = vld [vmem:[#allocation8 + $0xd8] ss:$12 sps:$4 sm:$0xff]  }
  0x5a   :  { %v1687_v40 = vld [vmem:[#allocation8 + $0xdc] ss:$12 sps:$4 sm:$0xff]   ;;  %v1692_v42 = vld [vmem:[#allocation8 + $0xf4] ss:$12 sps:$4 sm:$0xff]   ;;  %v1697_v44 = vld [vmem:[#allocation8 + $0x10c] ss:$12 sps:$4 sm:$0xff]  }
  0x5b   :  { %923 = vmatpush1.bf16.msra.mxu0 %v1659_v13  ;;  %1425 = vmatpush3.bf16.msra.mxu1 %v1689_v23  ;;  %v1690_v43 = vld [vmem:[#allocation8 + $0xf0] ss:$12 sps:$4 sm:$0xff]   ;;  %v1695_v45 = vld [vmem:[#allocation8 + $0x108] ss:$12 sps:$4 sm:$0xff]   ;;  %v1700_v47 = vld [vmem:[#allocation8 + $0x120] ss:$12 sps:$4 sm:$0xff]  }
  0x5c   :  { %924 = vmatprep.subr.bf16.mxu0 %v1664_v14  ;;  %1426 = vmatprep.subr.bf16.mxu1 %v1693_v25  ;;  %v1702_v46 = vld [vmem:[#allocation8 + $0x124] ss:$12 sps:$4 sm:$0xff]   ;;  %v1707_v48 = vld [vmem:[#allocation8 + $0x13c] ss:$12 sps:$4 sm:$0xff]   ;;  %v1712_v50 = vld [vmem:[#allocation8 + $0x154] ss:$12 sps:$4 sm:$0xff]  }
  0x5d   :  { %v1705_v49 = vld [vmem:[#allocation8 + $0x138] ss:$12 sps:$4 sm:$0xff]   ;;  %v1710_v52 = vld [vmem:[#allocation8 + $0x150] ss:$12 sps:$4 sm:$0xff]   ;;  %v1715_v56 = vld [vmem:[#allocation8 + $0x168] ss:$12 sps:$4 sm:$0xff]  }
  0x5e   :  { %v1713_v51 = vld [vmem:[#allocation8 + $0x158] ss:$12 sps:$4 sm:$0xff]   ;;  %v1718_v55 = vld [vmem:[#allocation8 + $0x170] ss:$12 sps:$4 sm:$0xff]   ;;  %v1723_v59 = vld [vmem:[#allocation8 + $0x248] ss:$12 sps:$4 sm:$0xff]  }
  0x5f   :  { %925 = vmatpush1.bf16.msra.mxu0 %v1662_v15  ;;  %1427 = vmatpush3.bf16.msra.mxu1 %v1694_v26  ;;  %v1714_v53 = vld [vmem:[#allocation8 + $0x98] ss:$12 sps:$4 sm:$0xff]   ;;  %v1719_v57 = vld [vmem:[#allocation8 + $0xb0] ss:$12 sps:$4 sm:$0xff]   ;;  %v98_v62 = vsub.s32 0, %v2007_v61  ;;  %v102_v0 = vsub.s32 1, %v2007_v61 }
  0x60   :  { %926 = vmatprep.subr.bf16.mxu0 %v1667_v16  ;;  %1428 = vmatprep.subr.bf16.mxu1 %v1698_v29  ;;  %v1717_v54 = vld [vmem:[#allocation8 + $0x16c] ss:$12 sps:$4 sm:$0xff]   ;;  %v1722_v58 = vld [vmem:[#allocation8 + $0x184] ss:$12 sps:$4 sm:$0xff]   ;;  %v106_v2 = vsub.s32 2, %v2007_v61  ;;  %v110_v4 = vsub.s32 3, %v2007_v61 }
  0x61   :  { %v94_v63 = vld [vmem:[%s2055_s2] sm:$0xf]  ;;  %v1720_v29 = vld [vmem:[#allocation8 + $0x180] ss:$12 sps:$4 sm:$0xff]   ;;  %s1915_s10 = smov [#allocation11]  }
  0x62   :  { %v99_v1 = vrot.slane %v94_v63, %v98_v62  ;;  %v103_v3 = vrot.slane %v94_v63, %v102_v0  ;;  %v107_v8 = vrot.slane %v94_v63, %v106_v2  ;;  %v111_v11 = vrot.slane %v94_v63, %v110_v4  ;;  %v1754_v60 = vld [vmem:[#allocation8 + $0x218] ss:$12 sps:$4 sm:$0xff]   ;;  %v1759_v4 = vld [vmem:[#allocation8 + $0x230] ss:$12 sps:$4 sm:$0xff]   ;;  %s1301_s11 = sshll.u32 %s1915_s10, 4  ;;  %s1302_s11 = int_to_ptr.vmem [resolvable:$true] %s1301_s11 }
  0x63   :  { %927 = vmatpush1.bf16.msra.mxu0 %v1665_v17  ;;  %1429 = vmatpush3.bf16.msra.mxu1 %v1699_v30  ;;  %v1724_v30 = vld [vmem:[#allocation8 + $0x188] ss:$12 sps:$4 sm:$0xff]   ;;  %v1757_v63 = vld [vmem:[#allocation8 + $0x22c] ss:$12 sps:$4 sm:$0xff]   ;;  %s1872_s12 = scalar_lea.vmem %s1302_s11, 256  ;;  %p1877_p5 = scmp.lt.s32.totalorder %s1302_s11, %s1302_s11 }
  0x64   :  { %928 = vmatprep.subr.bf16.mxu0 %v1670_v18  ;;  %1430 = vmatprep.subr.bf16.mxu1 %v1703_v33  ;;  %v1727_v33 = vld [vmem:[#allocation8 + $0x19c] ss:$12 sps:$4 sm:$0xff]   ;;  %p1873_p4 = scmp.ne.s32.totalorder %s1302_s11, %s1872_s12  ;;  %p1878_p6 = scmp.lt.s32.totalorder %s1872_s12, %s1872_s12 }
  0x66   :  { %p1879_p7 = por %p1878_p6, %p1877_p5 }
  0x67   :  { %929 = vmatpush1.bf16.msra.mxu0 %v1668_v21  ;;  %1431 = vmatpush3.bf16.msra.mxu1 %v1704_v35 }
  0x68   :  { %930 = vmatprep.subr.bf16.mxu0 %v1673_v24  ;;  %1432 = vmatprep.subr.bf16.mxu1 %v1708_v36  ;;  %p1880_p8 = pnand %p1879_p7, %p1873_p4 }
  0x6b   :  { %931 = vmatpush1.bf16.msra.mxu0 %v1671_v27  ;;  %1433 = vmatpush3.bf16.msra.mxu1 %v1709_v39  ;;  %v1729_v39 = vld [vmem:[#allocation8 + $0x1a0] ss:$12 sps:$4 sm:$0xff]  }
  0x6c   :  { %932 = vmatprep.subr.bf16.mxu0 %v1676_v28  ;;  %1434 = vmatprep.subr.bf16.mxu1 %v1713_v51  ;;  %v1740_v51 = vld [vmem:[#allocation8 + $0x1e0] ss:$12 sps:$4 sm:$0xff]  }
  0x6f   :  { %933 = vmatpush1.bf16.msra.mxu0 %v1674_v31  ;;  %1435 = vmatpush3.bf16.msra.mxu1 %v1714_v53  ;;  %v1747_v53 = vld [vmem:[#allocation8 + $0x1fc] ss:$12 sps:$4 sm:$0xff]  }
  0x70   :  { %934 = vmatprep.subr.bf16.mxu0 %v1679_v32  ;;  %1436 = vmatprep.subr.bf16.mxu1 %v1718_v55  ;;  %v1745_v55 = vld [vmem:[#allocation8 + $0x1f8] ss:$12 sps:$4 sm:$0xff]  }
  0x73   :  { %935 = vmatpush1.bf16.msra.mxu0 %v1677_v34  ;;  %1437 = vmatpush3.bf16.msra.mxu1 %v1719_v57  ;;  %v1728_v34 = vld [vmem:[#allocation8 + $0x260] ss:$12 sps:$4 sm:$0xff]  }
  0x74   :  { %936 = vmatprep.subr.bf16.mxu0 %v1682_v37  ;;  %1444 = vmatprep.subr.bf16.mxu1 %v1723_v59  ;;  %v1752_v57 = vld [vmem:[#allocation8 + $0x214] ss:$12 sps:$4 sm:$0xff]   ;;  %v1750_v59 = vld [vmem:[#allocation8 + $0x210] ss:$12 sps:$4 sm:$0xff]  }
  0x77   :  { %937 = vmatpush1.bf16.msra.mxu0 %v1680_v38  ;;  %v1725_v38 = vld [vmem:[#allocation8 + $0x198] ss:$12 sps:$4 sm:$0xff]  }
  0x78   :  { %938 = vmatprep.subr.bf16.mxu0 %v1687_v40 }
  0x7b   :  { %939 = vmatpush1.bf16.msra.mxu0 %v1685_v41  ;;  %v1732_v41 = vld [vmem:[#allocation8 + $0x1b4] ss:$12 sps:$4 sm:$0xff]  }
  0x7c   :  { %940 = vmatprep.subr.bf16.mxu0 %v1692_v42  ;;  %v1733_v42 = vld [vmem:[#allocation8 + $0x278] ss:$12 sps:$4 sm:$0xff]  }
  0x7f   :  { %941 = vmatpush1.bf16.msra.mxu0 %v1690_v43  ;;  %v1730_v43 = vld [vmem:[#allocation8 + $0x1b0] ss:$12 sps:$4 sm:$0xff]  }
  0x80   :  { %942 = vmatprep.subr.bf16.mxu0 %v1697_v44  ;;  %v1734_v44 = vld [vmem:[#allocation8 + $0x1b8] ss:$12 sps:$4 sm:$0xff]  }
  0x83   :  { %943 = vmatpush1.bf16.msra.mxu0 %v1695_v45  ;;  %v1737_v45 = vld [vmem:[#allocation8 + $0x1cc] ss:$12 sps:$4 sm:$0xff]  }
  0x84   :  { %944 = vmatprep.subr.bf16.mxu0 %v1702_v46  ;;  %v1738_v46 = vld [vmem:[#allocation8 + $0x290] ss:$12 sps:$4 sm:$0xff]  }
  0x87   :  { %945 = vmatpush1.bf16.msra.mxu0 %v1700_v47  ;;  %v1735_v47 = vld [vmem:[#allocation8 + $0x1c8] ss:$12 sps:$4 sm:$0xff]  }
  0x88   :  { %946 = vmatprep.subr.bf16.mxu0 %v1707_v48  ;;  %v1739_v48 = vld [vmem:[#allocation8 + $0x1d0] ss:$12 sps:$4 sm:$0xff]  }
  0x8b   :  { %947 = vmatpush1.bf16.msra.mxu0 %v1705_v49  ;;  %v1742_v49 = vld [vmem:[#allocation8 + $0x1e4] ss:$12 sps:$4 sm:$0xff]  }
  0x8c   :  { %948 = vmatprep.subr.bf16.mxu0 %v1712_v50  ;;  %v1743_v50 = vld [vmem:[#allocation8 + $0x2a8] ss:$12 sps:$4 sm:$0xff]  }
  0x8f   :  { %949 = vmatpush1.bf16.msra.mxu0 %v1710_v52  ;;  %v1744_v52 = vld [vmem:[#allocation8 + $0x1e8] ss:$12 sps:$4 sm:$0xff]  }
  0x90   :  { %950 = vmatprep.subr.bf16.mxu0 %v1717_v54  ;;  %v1748_v54 = vld [vmem:[#allocation8 + $0x2c0] ss:$12 sps:$4 sm:$0xff]  }
  0x93   :  { %951 = vmatpush1.bf16.msra.mxu0 %v1715_v56  ;;  %v1749_v56 = vld [vmem:[#allocation8 + $0x200] ss:$12 sps:$4 sm:$0xff]  }
  0x94   :  { %963 = vmatprep.subr.bf16.mxu0 %v1722_v58  ;;  %v1753_v58 = vld [vmem:[#allocation8 + $0x2d8] ss:$12 sps:$4 sm:$0xff]  }
 0x129   :  { %v199_v5 = vpop.f32.mrb[0].mxu0  ;;  %v242_v15 = vpop.f32.mrb[0].mxu1 }
 0x12a   :  { %v200_v6 = vadd.f32 %v199_v5, %v99_v1  ;;  %v201_v7 = vpop.f32.mrb[1].mxu0  ;;  %v243_v18 = vadd.f32 %v242_v15, %v107_v8  ;;  %v244_v19 = vpop.f32.mrb[1].mxu1  ;;  %v1762_v5 = vld [vmem:[#allocation8 + $0x244] ss:$12 sps:$4 sm:$0xff]   ;;  %v1777_v15 = vld [vmem:[#allocation8 + $0x2bc] ss:$12 sps:$4 sm:$0xff]  }
 0x12b   :  { %v202_v9 = vadd.f32 %v201_v7, %v103_v3  ;;  %v203_v10 = vpop.f32.mrb[2].mxu0  ;;  %v245_v22 = vadd.f32 %v244_v19, %v111_v11  ;;  %v246_v23 = vpop.f32.mrb[2].mxu1  ;;  %v1765_v7 = vld [vmem:[#allocation8 + $0x25c] ss:$12 sps:$4 sm:$0xff]   ;;  %v1783_v19 = vld [vmem:[#allocation8 + $0x2ec] ss:$12 sps:$4 sm:$0xff]  }
 0x12c   :  { %v204_v12 = vadd.f32 %v203_v10, %v99_v1  ;;  %v205_v13 = vpop.f32.mrb[3].mxu0  ;;  %v251_v16 = vmax.f32 %v200_v6, 0.0  ;;  %v253_v25 = vmax.f32 %v243_v18, 0.0  ;;  %v247_v26 = vadd.f32 %v246_v23, %v107_v8  ;;  %v248_v27 = vpop.f32.mrb[3].mxu1  ;;  %v1758_v1 = vld [vmem:[#allocation8 + $0x2f0] ss:$12 sps:$4 sm:$0xff]  }
 0x12d   :  { %v206_v14 = vadd.f32 %v205_v13, %v103_v3  ;;  %v252_v20 = vmax.f32 %v202_v9, 0.0  ;;  %v254_v31 = vmax.f32 %v245_v22, 0.0  ;;  %v249_v32 = vadd.f32 %v248_v27, %v111_v11  ;;  %v1755_v3 = vld [vmem:[#allocation8 + $0x228] ss:$12 sps:$4 sm:$0xff]   ;;  %v1760_v6 = vld [vmem:[#allocation8 + $0x240] ss:$12 sps:$4 sm:$0xff]  }
 0x12e   :  { %v255_v17 = vmax.f32 %v204_v12, 0.0  ;;  %v257_v35 = vmax.f32 %v247_v26, 0.0  ;;  %v1763_v8 = vld [vmem:[#allocation8 + $0x258] ss:$12 sps:$4 sm:$0xff]   ;;  %v1768_v9 = vld [vmem:[#allocation8 + $0x274] ss:$12 sps:$4 sm:$0xff]  }
 0x12f   :  { %v256_v21 = vmax.f32 %v206_v14, 0.0  ;;  %v258_v36 = vmax.f32 %v249_v32, 0.0  ;;  %v1766_v10 = vld [vmem:[#allocation8 + $0x270] ss:$12 sps:$4 sm:$0xff]   ;;  %v1771_v11 = vld [vmem:[#allocation8 + $0x28c] ss:$12 sps:$4 sm:$0xff]  }
 0x130   :  { %v259_v24 = vpack.c.bf16 %v255_v17, %v251_v16  ;;  %v2022_v37 = vpack.c.bf16 %v257_v35, %v253_v25  ;;  %v1769_v12 = vld [vmem:[#allocation8 + $0x288] ss:$12 sps:$4 sm:$0xff]   ;;  %v1774_v13 = vld [vmem:[#allocation8 + $0x2a4] ss:$12 sps:$4 sm:$0xff]   ;;  %v1772_v14 = vld [vmem:[#allocation8 + $0x2a0] ss:$12 sps:$4 sm:$0xff]  }
 0x131   :  { %v260_v28 = vpack.c.bf16 %v256_v21, %v252_v20  ;;  %v262_v40 = vpack.c.bf16 %v258_v36, %v254_v31  ;;  %v1775_v16 = vld [vmem:[#allocation8 + $0x2b8] ss:$12 sps:$4 sm:$0xff]   ;;  %v1780_v17 = vld [vmem:[#allocation8 + $0x2d4] ss:$12 sps:$4 sm:$0xff]   ;;  %v1778_v18 = vld [vmem:[#allocation8 + $0x2d0] ss:$12 sps:$4 sm:$0xff]  }
 0x132   :  { %v1781_v20 = vld [vmem:[#allocation8 + $0x2e8] ss:$12 sps:$4 sm:$0xff]   ;;  %v1110_v21 = vld [vmem:[#allocation9 + $0x80] sm:$0xff]  ;;  %v1097_v31 = vld [vmem:[#allocation9 + $0x18] sm:$0xff] }
 0x133   :  { %952 = vmatprep.mubr.bf16.mxu0 %v260_v28  ;;  %1038 = vmatprep.mubr.bf16.mxu1 %v260_v28  ;;  %v1111_v22 = vld [vmem:[#allocation9 + $0x88] sm:$0xff]  ;;  %v1112_v27 = vld [vmem:[#allocation9 + $0x90] sm:$0xff]  ;;  %v1113_v28 = vld [vmem:[#allocation9 + $0x98] sm:$0xff] }
 0x134   :  { %953 = vmatmul.mubr.bf16.vlgmr.msra.gmra.mrb[4].mxu0 %v259_v24  ;;  %1039 = vmatmul.mubr.bf16.vlgmr.msra.gmra.mrb[4].mxu1 %v259_v24  ;;  %v1557_v23 = vpack.c.bf16 %v1111_v22, %v1110_v21  ;;  %v1094_v24 = vld [vmem:[#allocation9] sm:$0xff]  ;;  %v1095_v25 = vld [vmem:[#allocation9 + $0x8] sm:$0xff] }
 0x135   :  { %964 = vmatpush1.bf16.msra.mxu0 %v1720_v29  ;;  %1445 = vmatpush3.bf16.msra.mxu1 %v1724_v30  ;;  %v1559_v26 = vpack.c.bf16 %v1095_v25, %v1094_v24  ;;  %v1561_v29 = vpack.c.bf16 %v1113_v28, %v1112_v27  ;;  %v1096_v30 = vld [vmem:[#allocation9 + $0x10] sm:$0xff]  ;;  %v1114_v32 = vld [vmem:[#allocation9 + $0xa0] sm:$0xff]  ;;  %v1099_v36 = vld [vmem:[#allocation9 + $0x28] sm:$0xff] }
 0x136   :  { %965 = vmatprep.subr.bf16.mxu0 %v1727_v33  ;;  %1446 = vmatprep.subr.bf16.mxu1 %v1728_v34  ;;  %v1563_v33 = vpack.c.bf16 %v1097_v31, %v1096_v30  ;;  %v1115_v34 = vld [vmem:[#allocation9 + $0xa8] sm:$0xff]  ;;  %v1098_v35 = vld [vmem:[#allocation9 + $0x20] sm:$0xff] }
 0x137   :  { %1079 = vmatprep.mubr.bf16.mxu1 %v262_v40  ;;  %995 = vmatprep.mubr.bf16.mxu0 %v262_v40  ;;  %v1567_v40 = vpack.c.bf16 %v1099_v36, %v1098_v35  ;;  %v1128_v36 = vld [vmem:[#allocation9 + $0x110] sm:$0xff] }
 0x139   :  { %966 = vmatpush1.bf16.msra.mxu0 %v1725_v38  ;;  %1447 = vmatpush3.bf16.msra.mxu1 %v1729_v39  ;;  %v1116_v38 = vld [vmem:[#allocation9 + $0xb0] sm:$0xff]  ;;  %v1117_v39 = vld [vmem:[#allocation9 + $0xb8] sm:$0xff] }
 0x13a   :  { %967 = vmatprep.subr.bf16.mxu0 %v1732_v41  ;;  %1448 = vmatprep.subr.bf16.mxu1 %v1733_v42  ;;  %v1569_v41 = vpack.c.bf16 %v1117_v39, %v1116_v38  ;;  %v1100_v42 = vld [vmem:[#allocation9 + $0x30] sm:$0xff] }
 0x13d   :  { %968 = vmatpush1.bf16.msra.mxu0 %v1730_v43  ;;  %1449 = vmatpush3.bf16.msra.mxu1 %v1734_v44  ;;  %v1101_v43 = vld [vmem:[#allocation9 + $0x38] sm:$0xff]  ;;  %v1118_v44 = vld [vmem:[#allocation9 + $0xc0] sm:$0xff] }
 0x13e   :  { %969 = vmatprep.subr.bf16.mxu0 %v1737_v45  ;;  %1450 = vmatprep.subr.bf16.mxu1 %v1738_v46  ;;  %v1119_v45 = vld [vmem:[#allocation9 + $0xc8] sm:$0xff]  ;;  %v1571_v46 = vpack.c.bf16 %v1101_v43, %v1100_v42 }
 0x141   :  { %970 = vmatpush1.bf16.msra.mxu0 %v1735_v47  ;;  %1451 = vmatpush3.bf16.msra.mxu1 %v1739_v48  ;;  %v1573_v47 = vpack.c.bf16 %v1119_v45, %v1118_v44  ;;  %v1102_v48 = vld [vmem:[#allocation9 + $0x40] sm:$0xff] }
 0x142   :  { %971 = vmatprep.subr.bf16.mxu0 %v1742_v49  ;;  %1452 = vmatprep.subr.bf16.mxu1 %v1743_v50  ;;  %v1103_v49 = vld [vmem:[#allocation9 + $0x48] sm:$0xff]  ;;  %v1120_v50 = vld [vmem:[#allocation9 + $0xd0] sm:$0xff]  ;;  %v1130_v45 = vld [vmem:[#allocation9 + $0x120] sm:$0xff] }
 0x145   :  { %972 = vmatpush1.bf16.msra.mxu0 %v1740_v51  ;;  %1453 = vmatpush3.bf16.msra.mxu1 %v1744_v52  ;;  %v1121_v51 = vld [vmem:[#allocation9 + $0xd8] sm:$0xff]  ;;  %v1575_v52 = vpack.c.bf16 %v1103_v49, %v1102_v48 }
 0x146   :  { %973 = vmatprep.subr.bf16.mxu0 %v1747_v53  ;;  %1454 = vmatprep.subr.bf16.mxu1 %v1748_v54  ;;  %v1577_v53 = vpack.c.bf16 %v1121_v51, %v1120_v50  ;;  %v1104_v54 = vld [vmem:[#allocation9 + $0x50] sm:$0xff]  ;;  %v1133_v48 = vld [vmem:[#allocation9 + $0x138] sm:$0xff]  ;;  %v1134_v50 = vld [vmem:[#allocation9 + $0x140] sm:$0xff] }
 0x147   :  { %v1135_v51 = vld [vmem:[#allocation9 + $0x148] sm:$0xff] }
 0x149   :  { %974 = vmatpush1.bf16.msra.mxu0 %v1745_v55  ;;  %1455 = vmatpush3.bf16.msra.mxu1 %v1749_v56  ;;  %v1105_v55 = vld [vmem:[#allocation9 + $0x58] sm:$0xff]  ;;  %v1122_v56 = vld [vmem:[#allocation9 + $0xe0] sm:$0xff] }
 0x14a   :  { %975 = vmatprep.subr.bf16.mxu0 %v1752_v57  ;;  %1456 = vmatprep.subr.bf16.mxu1 %v1753_v58  ;;  %v1123_v57 = vld [vmem:[#allocation9 + $0xe8] sm:$0xff]  ;;  %v1579_v58 = vpack.c.bf16 %v1105_v55, %v1104_v54  ;;  %v1137_v54 = vld [vmem:[#allocation9 + $0x158] sm:$0xff] }
 0x14d   :  { %976 = vmatpush1.bf16.msra.mxu0 %v1750_v59  ;;  %1457 = vmatpush3.bf16.msra.mxu1 %v1754_v60  ;;  %v1581_v59 = vpack.c.bf16 %v1123_v57, %v1122_v56  ;;  %v1106_v60 = vld [vmem:[#allocation9 + $0x60] sm:$0xff]  ;;  %v1139_v57 = vld [vmem:[#allocation9 + $0x168] sm:$0xff] }
 0x14e   :  { %977 = vmatprep.subr.bf16.mxu0 %v1757_v63  ;;  %1458 = vmatprep.subr.bf16.mxu1 %v1758_v1  ;;  %v1107_v63 = vld [vmem:[#allocation9 + $0x68] sm:$0xff]  ;;  %v1138_v56 = vld [vmem:[#allocation9 + $0x160] sm:$0xff] }
 0x14f   :  { %v1583_v1 = vpack.c.bf16 %v1107_v63, %v1106_v60  ;;  %v1141_v60 = vld [vmem:[#allocation9 + $0x178] sm:$0xff] }
 0x151   :  { %978 = vmatpush1.bf16.msra.mxu0 %v1755_v3  ;;  %1459 = vmatpush3.bf16.msra.mxu1 %v1759_v4  ;;  %v1124_v3 = vld [vmem:[#allocation9 + $0xf0] sm:$0xff]  ;;  %v1125_v4 = vld [vmem:[#allocation9 + $0xf8] sm:$0xff] }
 0x152   :  { %979 = vmatprep.subr.bf16.mxu0 %v1762_v5  ;;  %1558 = vmatprep.subr.bf16.mxu1 %v1557_v23  ;;  %v1585_v5 = vpack.c.bf16 %v1125_v4, %v1124_v3 }
 0x154   :  { %1080 = vmatmul.mubr.bf16.vlgmr.msra.gmra.mrb[8].mxu1 %v2022_v37 }
 0x155   :  { %980 = vmatpush1.bf16.msra.mxu0 %v1760_v6  ;;  %1560 = vmatpush3.bf16.msra.mxu1 %v1559_v26  ;;  %v1108_v6 = vld [vmem:[#allocation9 + $0x70] sm:$0xff] }
 0x156   :  { %981 = vmatprep.subr.bf16.mxu0 %v1765_v7  ;;  %1562 = vmatprep.subr.bf16.mxu1 %v1561_v29  ;;  %v1109_v7 = vld [vmem:[#allocation9 + $0x78] sm:$0xff] }
 0x159   :  { %982 = vmatpush1.bf16.msra.mxu0 %v1763_v8  ;;  %1564 = vmatpush3.bf16.msra.mxu1 %v1563_v33  ;;  %v1587_v8 = vpack.c.bf16 %v1109_v7, %v1108_v6 }
 0x15a   :  { %983 = vmatprep.subr.bf16.mxu0 %v1768_v9  ;;  %v1126_v9 = vld [vmem:[#allocation9 + $0x100] sm:$0xff] }
 0x15d   :  { %984 = vmatpush1.bf16.msra.mxu0 %v1766_v10  ;;  %v1127_v10 = vld [vmem:[#allocation9 + $0x108] sm:$0xff] }
 0x15e   :  { %985 = vmatprep.subr.bf16.mxu0 %v1771_v11  ;;  %v1589_v11 = vpack.c.bf16 %v1127_v10, %v1126_v9  ;;  %v1143_v9 = vstv %s2059_s6 }
 0x161   :  { %986 = vmatpush1.bf16.msra.mxu0 %v1769_v12 }
 0x162   :  { %987 = vmatprep.subr.bf16.mxu0 %v1774_v13 }
 0x165   :  { %988 = vmatpush1.bf16.msra.mxu0 %v1772_v14 }
 0x166   :  { %989 = vmatprep.subr.bf16.mxu0 %v1777_v15 }
 0x169   :  { %990 = vmatpush1.bf16.msra.mxu0 %v1775_v16 }
 0x16a   :  { %991 = vmatprep.subr.bf16.mxu0 %v1780_v17 }
 0x16d   :  { %992 = vmatpush1.bf16.msra.mxu0 %v1778_v18  ;;  %v391_v18 = vld [vmem:[%s2057_s4] sm:$0x7] }
 0x16e   :  { %993 = vmatprep.subr.bf16.mxu0 %v1783_v19  ;;  %v404_v19 = vrot.slane %v391_v18, %v106_v2  ;;  %v396_v30 = vrot.slane %v391_v18, %v98_v62  ;;  %v400_v31 = vrot.slane %v391_v18, %v102_v0  ;;  %v1131_v62 = vld [vmem:[#allocation9 + $0x128] sm:$0xff] }
 0x16f   :  { %v1597_v0 = vpack.c.bf16 %v1131_v62, %v1130_v45 }
 0x171   :  { %994 = vmatpush1.bf16.msra.mxu0 %v1781_v20 }
 0x174   :  { %996 = vmatmul.mubr.bf16.vlgmr.msra.gmra.mrb[4].mxu0 %v2022_v37  ;;  %v1565_v37 = vpack.c.bf16 %v1115_v34, %v1114_v32 }
 0x176   :  { %1566 = vmatprep.subr.bf16.mxu1 %v1565_v37  ;;  %v1129_v37 = vld [vmem:[#allocation9 + $0x118] sm:$0xff] }
 0x177   :  { %1568 = vmatpush3.bf16.msra.mxu1 %v1567_v40  ;;  %v1593_v43 = vpack.c.bf16 %v1129_v37, %v1128_v36 }
 0x178   :  { %1570 = vmatprep.subr.bf16.mxu1 %v1569_v41 }
 0x17b   :  { %1572 = vmatpush3.bf16.msra.mxu1 %v1571_v46 }
 0x17c   :  { %1574 = vmatprep.subr.bf16.mxu1 %v1573_v47  ;;  %v1132_v47 = vld [vmem:[#allocation9 + $0x130] sm:$0xff] }
 0x17d   :  { %v1601_v49 = vpack.c.bf16 %v1133_v48, %v1132_v47 }
 0x17f   :  { %1576 = vmatpush3.bf16.msra.mxu1 %v1575_v52  ;;  %v1605_v52 = vpack.c.bf16 %v1135_v51, %v1134_v50 }
 0x180   :  { %1578 = vmatprep.subr.bf16.mxu1 %v1577_v53  ;;  %v1136_v53 = vld [vmem:[#allocation9 + $0x150] sm:$0xff] }
 0x181   :  { %v1609_v55 = vpack.c.bf16 %v1137_v54, %v1136_v53 }
 0x183   :  { %1580 = vmatpush3.bf16.msra.mxu1 %v1579_v58  ;;  %v1613_v58 = vpack.c.bf16 %v1139_v57, %v1138_v56 }
 0x184   :  { %1582 = vmatprep.subr.bf16.mxu1 %v1581_v59  ;;  %v1140_v59 = vld [vmem:[#allocation9 + $0x170] sm:$0xff] }
 0x185   :  { %v1617_v63 = vpack.c.bf16 %v1141_v60, %v1140_v59 }
 0x187   :  { %1584 = vmatpush3.bf16.msra.mxu1 %v1583_v1 }
 0x188   :  { %1586 = vmatprep.subr.bf16.mxu1 %v1585_v5 }
 0x18b   :  { %1588 = vmatpush3.bf16.msra.mxu1 %v1587_v8 }
 0x18c   :  { %1590 = vmatprep.subr.bf16.mxu1 %v1589_v11 }
 0x207   :  { %v1438_v12 = vpop.f32.mrb[4].mxu1 }
 0x208   :  { %v1439_v13 = vpop.f32.mrb[5].mxu1 }
 0x209   :  { %v1440_v14 = vadd.f32 %v1439_v13, %v1438_v12  ;;  %v1441_v15 = vpop.f32.mrb[6].mxu1 }
 0x20a   :  { %v1442_v16 = vpop.f32.mrb[7].mxu1 }
 0x20b   :  { %v1443_v17 = vadd.f32 %v1442_v16, %v1441_v15  ;;  %v1041_v22 = vadd.f32 %v1440_v14, %v404_v19 }
 0x20d   :  { %v1044_v26 = vadd.f32 %v1443_v17, %v404_v19 }
 0x227   :  { %v1460_v20 = vpop.f32.mrb[8].mxu1 }
 0x228   :  { %v1461_v21 = vpop.f32.mrb[9].mxu1 }
 0x229   :  { %v1462_v23 = vadd.f32 %v1461_v21, %v1460_v20  ;;  %v1463_v24 = vpop.f32.mrb[10].mxu1 }
 0x22a   :  { %v1464_v25 = vpop.f32.mrb[11].mxu1 }
 0x22b   :  { %v1082_v27 = vadd.f32 %v1462_v23, %v1041_v22  ;;  %v1465_v28 = vadd.f32 %v1464_v25, %v1463_v24 }
 0x22d   :  { %v1085_v29 = vadd.f32 %v1465_v28, %v1044_v26  ;;  %v1090_v46 = vmax.f32 %v1082_v27, 0.0 }
 0x22f   :  { %v1093_v1 = vmax.f32 %v1085_v29, 0.0 }
 0x247   :  { %v997_v32 = vpop.f32.mrb[4].mxu0 }
 0x248   :  { %v1621_v33 = vadd.f32 %v997_v32, %v396_v30  ;;  %v999_v34 = vpop.f32.mrb[5].mxu0 }
 0x249   :  { %v1622_v2 = vadd.f32 %v999_v34, %v400_v31  ;;  %v1001_v35 = vpop.f32.mrb[6].mxu0 }
 0x24a   :  { %v1003_v38 = vpop.f32.mrb[7].mxu0  ;;  %v1088_v41 = vmax.f32 %v1621_v33, 0.0  ;;  %v1623_v42 = vadd.f32 %v1001_v35, %v396_v30 }
 0x24b   :  { %v1089_v39 = vmax.f32 %v1622_v2, 0.0  ;;  %v1624_v40 = vadd.f32 %v1003_v38, %v400_v31 }
 0x24c   :  { %v1091_v61 = vmax.f32 %v1623_v42, 0.0 }
 0x24d   :  { %v1092_v44 = vmax.f32 %v1624_v40, 0.0  ;;  %1208 = vmatprep.mubr.f32.mxu1 %v1089_v39 }
 0x24e   :  { %1209 = vmatmul.mubr.f32.vlgmr.msra.gmra.mrb[12].mxu1 %v1088_v41 }
 0x24f   :  { %1592 = vmatpush3.bf16.msra.mxu1 %v1589_v11  ;;  %1213 = vmatprep.mubr.f32.mxu1 %v1092_v44 }
 0x250   :  { %1594 = vmatprep.subr.bf16.mxu1 %v1593_v43 }
 0x252   :  { %1214 = vmatmul.mubr.f32.gmra.mrb[14].mxu1 %v1091_v61 }
 0x253   :  { %1596 = vmatpush3.bf16.msra.mxu1 %v1593_v43  ;;  %1554 = vmatprep.mubr.f32.mxu1 %v1090_v46 }
 0x254   :  { %1598 = vmatprep.subr.bf16.mxu1 %v1597_v0 }
 0x257   :  { %1600 = vmatpush3.bf16.msra.mxu1 %v1597_v0 }
 0x258   :  { %1602 = vmatprep.subr.bf16.mxu1 %v1601_v49 }
 0x25b   :  { %1604 = vmatpush3.bf16.msra.mxu1 %v1601_v49 }
 0x25c   :  { %1606 = vmatprep.subr.bf16.mxu1 %v1605_v52 }
 0x25f   :  { %1608 = vmatpush3.bf16.msra.mxu1 %v1605_v52 }
 0x260   :  { %1610 = vmatprep.subr.bf16.mxu1 %v1609_v55 }
 0x263   :  { %1612 = vmatpush3.bf16.msra.mxu1 %v1609_v55 }
 0x264   :  { %1614 = vmatprep.subr.bf16.mxu1 %v1613_v58 }
 0x267   :  { %1616 = vmatpush3.bf16.msra.mxu1 %v1613_v58 }
 0x268   :  { %1618 = vmatprep.subr.bf16.mxu1 %v1617_v63 }
 0x26b   :  { %1620 = vmatpush3.bf16.msra.mxu1 %v1617_v63 }
 0x26e   :  { %1555 = vmatmul.mubr.f32.vlgmr.msra.gmra.mrb[16].mxu1 %v1093_v1 }
 0x321   :  { %v1498_v3 = vpop.f32.mrb[12].mxu1 }
 0x322   :  { %v1499_v4 = vpop.f32.mrb[13].mxu1 }
 0x323   :  { %v1500_v5 = vadd.f32 %v1499_v4, %v1498_v3 }
 0x325   :  { %v1501_v6 = vpop.f32.mrb[14].mxu1  ;;  %v1211_v12 = vadd.f32 %v1500_v5, %v1143_v9 }
 0x326   :  { %v1502_v7 = vpop.f32.mrb[15].mxu1 }
 0x327   :  { %v1503_v8 = vadd.f32 %v1502_v7, %v1501_v6 }
 0x329   :  { %v1216_v10 = vadd.f32 %v1503_v8, %v1143_v9 }
 0x341   :  { %v1556_v11 = vpop.f32.mrb[16].mxu1 }
 0x342   :  { %v1291_v13 = vadd.f32 %v1556_v11, %v1216_v10  ;;  %v1285_v14 = vpop.f32.mrb[17].mxu1 }
 0x343   :  { %v1286_v15 = vadd.f32 %v1285_v14, %v1211_v12 }
 0x344   :  { %1295 = vst [vmem:[#allocation11 + $0x8] sm:$0xff] %v1291_v13 }
 0x345   :  { %1294 = vst [vmem:[#allocation11] sm:$0xff] %v1286_v15 }
 0x346   :  { %1883 = shalt.err (!%p1880_p8)
}
 0x347   :  { %s1884_s14 = scalar_lea.hbm %s2060_s7, 256 }
 0x348   :  { %p1885_p9 = scmp.ne.s32.totalorder %s2060_s7, %s1884_s14  ;;  %p1888_p10 = scmp.lt.u32.totalorder %s1884_s14, %s2060_s7 }
 0x34a   :  { %p1890_p11 = pnand %p1888_p10, %p1885_p9 }
 0x34c   :  { %1893 = shalt.err (!%p1890_p11)
}
 0x34d   :  { %1307 = dma.vmem_to_hbm [thread:$0]  %s1302_s11, 256, %s2060_s7, [#allocation5], %s1912_s3, %s1912_s3, %s1913_s27  }
 0x34e   :  { %1900 = dma.done.wait [#allocation5], 256  }
 0x34f   :  { %1901 = vsyncadd [#allocation5], 4294967040 }
 0x350   :  { %1311 = vsyncpa [#allocation4], 1 }
 0x351   :  { %1312 = vsyncpa [#allocation7], 1 }
 0x352   :  { %1313 = vsyncpa [#allocation10], 1 }
 0x353   :  { %1314 = vsyncpa [#allocation5], 1 }

</bundles_post_ra>
